<compile_context>
chip_gen: v5e
topology: v5e:2x2
jax: 0.10.0
libtpu: 0.0.40
codegen_flags: <defaults>
</compile_context>

<pallas_src>
import functools

import jax
import jax.numpy as jnp
from jax.experimental import pallas as pl
from jax.experimental.pallas import tpu as pltpu

EPS = 1e-5

# Keep at least this many row-tile grid steps when NC allows: enables
# DMA/compute overlap and the 2x megacore split on v7x.
_MIN_ROW_STEPS = 8


def _compute_vmem_limit_bytes():
    """Per-generation scoped-VMEM limit for this kernel.

    v5e/v6e (128 MiB physical) -> 64 MiB scoped; v7x (64 MiB physical) ->
    40 MiB scoped.  Conservative 40 MiB fallback if the query fails (e.g.
    interpret mode / no TPU visible at import time)."""
    cap = None
    try:
        get_info = getattr(pltpu, "get_tpu_info", None)
        if get_info is not None:
            cap = int(get_info().vmem_capacity_bytes)
    except Exception:
        cap = None
    if not cap:
        cap = 64 * 1024 * 1024
    return int(min(64 * 1024 * 1024, max(cap - 24 * 1024 * 1024, cap // 2)))


_VMEM_LIMIT_BYTES = _compute_vmem_limit_bytes()


# ----------------------------- tiling ------------------------------------ #

def _pick_tiles(nc, hw, in_bytes, *, vmem_budget_bytes=None):
    """Returns (row_tile, hw_tile).

    hw_tile == hw selects the fused one-pass path (full spatial extent
    resident per row tile); otherwise the spatial axis is chunked and the
    two-pass fallback is used.  Fused feasibility is budgeted against the
    scoped VMEM limit: 2x double-buffered input (native dtype) + 2x output
    (native dtype) + ~3 full-tile f32 temporaries, with ~15% headroom."""
    budget = _VMEM_LIMIT_BYTES if vmem_budget_bytes is None else vmem_budget_bytes
    per_elem = 4 * in_bytes + 12            # 2*in + 2*out + ~3 f32 temps
    max_elems = max(1, (budget * 85 // 100) // per_elem)
    min_rows = nc if nc < 8 else 8          # sublane quantum (or full extent)

    if min_rows * hw <= max_elems:
        # Fused path: as many rows as the budget allows, but never collapse
        # the grid to fewer than _MIN_ROW_STEPS tiles when NC allows.
        rows_fit = max(min_rows, max_elems // hw)
        rows_cap = max(min_rows, pl.cdiv(nc, _MIN_ROW_STEPS))
        rows = min(rows_fit, rows_cap, nc)
        if rows < nc:
            rows = max(min_rows, (rows // 8) * 8)
        return int(rows), int(hw)

    # Large-HW fallback: chunk the lane axis in multiples of 128.
    hw_tile = ((max_elems // min_rows) // 128) * 128
    hw_tile = int(max(128, min(hw, hw_tile)))
    return int(min_rows), hw_tile


# ----------------------------- kernels ------------------------------------ #

def _stats_fused_kernel(x_ref, mean_ref, std_ref):
    # x_ref: (rows, HW) -- each row is one (n, c) instance, full spatial extent.
    x = x_ref[...].astype(jnp.float32)
    hw = x.shape[-1]
    mean = jnp.sum(x, axis=-1, keepdims=True) * (1.0 / hw)
    d = x - mean                                           # centered moments
    var = jnp.sum(d * d, axis=-1, keepdims=True) * (1.0 / (hw - 1))  # unbiased
    mean_ref[...] = mean
    std_ref[...] = jnp.sqrt(var)


def _adain_fused_kernel(x_ref, smean_ref, sstd_ref, o_ref):
    # x_ref: (rows, HW); smean/sstd: (rows, 1) stored style stats (std has +eps).
    x = x_ref[...].astype(jnp.float32)
    hw = x.shape[-1]
    mean = jnp.sum(x, axis=-1, keepdims=True) * (1.0 / hw)
    d = x - mean
    var = jnp.sum(d * d, axis=-1, keepdims=True) * (1.0 / (hw - 1))
    content_std = jnp.sqrt(var) + EPS          # calc_mean_std adds eps to std
    # Exact per-row reciprocal: the divide acts on the tiny (rows, 1) vector,
    # so it is off the critical slot; the (rows, HW) tensor only sees mul+add.
    scale = sstd_ref[...] / content_std
    o_ref[...] = (d * scale + smean_ref[...]).astype(o_ref.dtype)


def _stats_chunk_kernel(x_ref, mean_ref, std_ref, *, hw_total, hw_tile):
    # Large-HW fallback: grid = (row_tiles, hw_tiles), spatial axis last
    # ("arbitrary").  mean_ref/std_ref double as sum / sum-of-squares
    # accumulators until the final spatial chunk.
    j = pl.program_id(1)
    nj = pl.num_programs(1)

    @pl.when(j == 0)
    def _init():
        mean_ref[...] = jnp.zeros_like(mean_ref)
        std_ref[...] = jnp.zeros_like(std_ref)

    def _accumulate(mask_tail):
        x = x_ref[...].astype(jnp.float32)
        if mask_tail:
            lane = jax.lax.broadcasted_iota(jnp.int32, x.shape, 1) + j * hw_tile
            x = jnp.where(lane < hw_total, x, 0.0)
        mean_ref[...] += jnp.sum(x, axis=-1, keepdims=True)
        std_ref[...] += jnp.sum(x * x, axis=-1, keepdims=True)

    if hw_total % hw_tile != 0:
        # Pay the tail mask (iota/cmp/select) only on the final partial chunk.
        @pl.when(j < nj - 1)
        def _full():
            _accumulate(False)

        @pl.when(j == nj - 1)
        def _tail():
            _accumulate(True)
    else:
        _accumulate(False)

    @pl.when(j == nj - 1)
    def _finalize():
        s1 = mean_ref[...]
        s2 = std_ref[...]
        mean = s1 * (1.0 / hw_total)
        # Single-pass moments; clamp guards f32 cancellation.
        # TODO(synk): pilot-mean / chunk-combine would be more robust when
        # |mean| >> std at very large H*W.
        var = jnp.maximum((s2 - s1 * mean) * (1.0 / (hw_total - 1)), 0.0)
        mean_ref[...] = mean
        std_ref[...] = jnp.sqrt(var)


def _affine_kernel(x_ref, scale_ref, shift_ref, o_ref):
    # Elementwise restylize for the large-HW fallback (scale/shift precomputed).
    o_ref[...] = (x_ref[...].astype(jnp.float32) * scale_ref[...]
                  + shift_ref[...]).astype(o_ref.dtype)


# ----------------------------- pallas wrappers ---------------------------- #

def _stats_chunked(x, rows, hw_tile):
    NC, HW = x.shape
    kernel = functools.partial(_stats_chunk_kernel, hw_total=HW, hw_tile=hw_tile)
    # NOTE: the (NC, 1) stats outputs use masked lane stores, but they are
    # tiny next to the (rows, hw_tile) input DMA.
    return pl.pallas_call(
        kernel,
        out_shape=(jax.ShapeDtypeStruct((NC, 1), jnp.float32),
                   jax.ShapeDtypeStruct((NC, 1), jnp.float32)),
        grid_spec=pltpu.PrefetchScalarGridSpec(
            num_scalar_prefetch=0,
            grid=(pl.cdiv(NC, rows), pl.cdiv(HW, hw_tile)),
            in_specs=[pl.BlockSpec((rows, hw_tile), lambda i, j: (i, j))],
            out_specs=(pl.BlockSpec((rows, 1), lambda i, j: (i, 0)),
                       pl.BlockSpec((rows, 1), lambda i, j: (i, 0)))),
        compiler_params=pltpu.CompilerParams(
            dimension_semantics=("parallel", "arbitrary"),
            vmem_limit_bytes=_VMEM_LIMIT_BYTES),
    )(x)


def calc_mean_std_pallas(feat, eps=EPS, *, vmem_budget_bytes=None):
    """feat: (N, C, H, W) -> (mean, std+eps), each (N, C, 1, 1) float32."""
    N, C, H, W = feat.shape
    HW = H * W
    NC = N * C
    x = feat.reshape(NC, HW)
    rows, hw_tile = _pick_tiles(NC, HW, x.dtype.itemsize,
                                vmem_budget_bytes=vmem_budget_bytes)
    if hw_tile == HW:
        mean, std = pl.pallas_call(
            _stats_fused_kernel,
            out_shape=(jax.ShapeDtypeStruct((NC, 1), jnp.float32),
                       jax.ShapeDtypeStruct((NC, 1), jnp.float32)),
            grid_spec=pltpu.PrefetchScalarGridSpec(
                num_scalar_prefetch=0,
                grid=(pl.cdiv(NC, rows),),
                in_specs=[pl.BlockSpec((rows, HW), lambda i: (i, 0))],
                out_specs=(pl.BlockSpec((rows, 1), lambda i: (i, 0)),
                           pl.BlockSpec((rows, 1), lambda i: (i, 0)))),
            compiler_params=pltpu.CompilerParams(
                dimension_semantics=("parallel",),
                vmem_limit_bytes=_VMEM_LIMIT_BYTES),
        )(x)
    else:
        mean, std = _stats_chunked(x, rows, hw_tile)
    return mean.reshape(N, C, 1, 1), std.reshape(N, C, 1, 1) + eps


def adain_apply_pallas(feat, style_mean, style_std, *, vmem_budget_bytes=None):
    """feat: (N, C, H, W); style_mean/style_std: (N, C, 1, 1) (std has +eps)."""
    N, C, H, W = feat.shape
    HW = H * W
    NC = N * C
    x = feat.reshape(NC, HW)
    sm = style_mean.reshape(NC, 1).astype(jnp.float32)
    ss = style_std.reshape(NC, 1).astype(jnp.float32)
    rows, hw_tile = _pick_tiles(NC, HW, x.dtype.itemsize,
                                vmem_budget_bytes=vmem_budget_bytes)

    if hw_tile == HW:
        # Fused: content stats + restylize in a single pass over each row tile.
        out = pl.pallas_call(
            _adain_fused_kernel,
            out_shape=jax.ShapeDtypeStruct((NC, HW), feat.dtype),
            grid_spec=pltpu.PrefetchScalarGridSpec(
                num_scalar_prefetch=0,
                grid=(pl.cdiv(NC, rows),),
                in_specs=[pl.BlockSpec((rows, HW), lambda i: (i, 0)),
                          pl.BlockSpec((rows, 1), lambda i: (i, 0)),
                          pl.BlockSpec((rows, 1), lambda i: (i, 0))],
                out_specs=pl.BlockSpec((rows, HW), lambda i: (i, 0))),
            compiler_params=pltpu.CompilerParams(
                dimension_semantics=("parallel",),
                vmem_limit_bytes=_VMEM_LIMIT_BYTES),
        )(x, sm, ss)
    else:
        # Large-HW fallback: (1) chunked stats pass, (2) elementwise affine
        # pass.  Costs one extra HBM read of x but scales to any spatial size.
        cmean, cstd = _stats_chunked(x, rows, hw_tile)
        cstd = cstd + EPS                       # calc_mean_std semantics
        scale = ss / cstd                       # tiny (NC, 1) vectors in XLA
        shift = sm - cmean * scale
        out = pl.pallas_call(
            _affine_kernel,
            out_shape=jax.ShapeDtypeStruct((NC, HW), feat.dtype),
            grid_spec=pltpu.PrefetchScalarGridSpec(
                num_scalar_prefetch=0,
                grid=(pl.cdiv(NC, rows), pl.cdiv(HW, hw_tile)),
                in_specs=[pl.BlockSpec((rows, hw_tile), lambda i, j: (i, j)),
                          pl.BlockSpec((rows, 1), lambda i, j: (i, 0)),
                          pl.BlockSpec((rows, 1), lambda i, j: (i, 0))],
                out_specs=pl.BlockSpec((rows, hw_tile), lambda i, j: (i, j))),
            compiler_params=pltpu.CompilerParams(
                dimension_semantics=("parallel", "parallel"),
                vmem_limit_bytes=_VMEM_LIMIT_BYTES),
        )(x, scale, shift)
    return out.reshape(N, C, H, W)


class AdaptiveInstanceNormalizationPallas:
    """Mirrors deva/model/adain.py::AdaptiveInstanceNormalization (no weights).
    `need_style_update` is controlled externally, exactly as in the module."""

    def __init__(self):
        self.init_style()
        self.need_style_update = True

    def init_style(self):
        self.style_mean, self.style_std = None, None

    def update_style(self, x_style):
        self.style_mean, self.style_std = calc_mean_std_pallas(x_style)

    def forward(self, feat):
        if self.need_style_update:
            self.update_style(feat)
            return feat
        return adain_apply_pallas(feat, self.style_mean, self.style_std)

    __call__ = forward


# ----------------------------- reference ---------------------------------- #

def _calc_mean_std_ref(feat, eps=EPS):
    N, C = feat.shape[:2]
    x = feat.reshape(N, C, -1)
    mean = jnp.mean(x, axis=2)
    std = jnp.std(x, axis=2, ddof=1)
    return mean.reshape(N, C, 1, 1), std.reshape(N, C, 1, 1) + eps


def _adain_ref(feat, style_mean, style_std):
    cmean, cstd = _calc_mean_std_ref(feat)
    return (feat - cmean) / cstd * style_std + style_mean


# ------------------------------- main -------------------------------------- #

if __name__ == "__main__":
    key = jax.random.PRNGKey(0)
    k_style, k_content, k_style2, k_content2 = jax.random.split(key, 4)

    N, C, H, W = 2, 4, 16, 16
    feat_style = jax.random.normal(k_style, (N, C, H, W), jnp.float32) * 2.0 + 0.5
    feat_content = jax.random.normal(k_content, (N, C, H, W), jnp.float32)

    adain = AdaptiveInstanceNormalizationPallas()

    # 1) need_style_update path: stores style stats, returns input as-is.
    out1 = jax.block_until_ready(adain(feat_style))
    assert jnp.allclose(out1, feat_style), "first-call passthrough mismatch"

    ref_mean, ref_std = _calc_mean_std_ref(feat_style)
    assert jnp.allclose(adain.style_mean, ref_mean, atol=1e-5, rtol=1e-5)
    assert jnp.allclose(adain.style_std, ref_std, atol=1e-5, rtol=1e-5)

    # 2) Externally flip the flag (mirrors how the module is driven in DEVA);
    #    fused normalize + restylize path.
    adain.need_style_update = False
    out2 = jax.block_until_ready(adain(feat_content))
    ref2 = _adain_ref(feat_content, ref_mean, ref_std)
    assert jnp.allclose(out2, ref2, atol=1e-4, rtol=1e-4), "adain apply (fused) mismatch"

    # 3) Exercise the large-HW fallback (chunked spatial reduction + affine
    #    pass) by forcing a tiny per-tile budget on the same small inputs.
    small_budget = 8 * 128 * 32
    m_c, s_c = calc_mean_std_pallas(feat_style, vmem_budget_bytes=small_budget)
    assert jnp.allclose(m_c, ref_mean, atol=1e-5, rtol=1e-5)
    assert jnp.allclose(s_c, ref_std, atol=1e-4, rtol=1e-4)
    out3 = adain_apply_pallas(feat_content, adain.style_mean, adain.style_std,
                              vmem_budget_bytes=small_budget)
    out3 = jax.block_until_ready(out3)
    assert jnp.allclose(out3, ref2, atol=1e-4, rtol=1e-4), "adain apply (chunked) mismatch"

    # 4) Non-multiple-of-128 spatial extent: fused lane-padded path and the
    #    chunked path with a partial last spatial chunk (tail mask).
    N2, C2, H2, W2 = 1, 8, 9, 25   # HW = 225
    fs2 = jax.random.normal(k_style2, (N2, C2, H2, W2), jnp.float32) * 1.5 - 0.25
    fc2 = jax.random.normal(k_content2, (N2, C2, H2, W2), jnp.float32)
    sm2, ss2 = calc_mean_std_pallas(fs2)
    rm2, rs2 = _calc_mean_std_ref(fs2)
    assert jnp.allclose(sm2, rm2, atol=1e-5, rtol=1e-5)
    assert jnp.allclose(ss2, rs2, atol=1e-5, rtol=1e-5)
    ref4 = _adain_ref(fc2, rm2, rs2)
    out4 = jax.block_until_ready(adain_apply_pallas(fc2, sm2, ss2))
    assert jnp.allclose(out4, ref4, atol=1e-4, rtol=1e-4), "adain apply (odd HW) mismatch"
    m_c2, s_c2 = calc_mean_std_pallas(fs2, vmem_budget_bytes=small_budget)
    assert jnp.allclose(m_c2, rm2, atol=1e-5, rtol=1e-5)
    assert jnp.allclose(s_c2, rs2, atol=1e-4, rtol=1e-4)
    out5 = jax.block_until_ready(
        adain_apply_pallas(fc2, sm2, ss2, vmem_budget_bytes=small_budget))
    assert jnp.allclose(out5, ref4, atol=1e-4, rtol=1e-4), "adain apply (chunked odd HW) mismatch"

    print("KERNEL_OK")
</pallas_src>

<mosaic_0001>
module attributes {stable_mosaic.version = 11 : i64} {
  func.func @_stats_fused_kernel(%arg0: i32, %arg1: memref<8x256xf32, #tpu.memory_space<vmem>>, %arg2: memref<8x1xf32, #tpu.memory_space<vmem>>, %arg3: memref<8x1xf32, #tpu.memory_space<vmem>>) attributes {dimension_semantics = [#tpu.dimension_semantics<parallel>], iteration_bounds = array<i64: 1>, scalar_prefetch = 0 : i64, scratch_operands = 0 : i64, tpu.core_type = #tpu.core_type<tc>, window_params = [{transform_indices = @transform_0, window_bounds = array<i64: 8, 256>}, {transform_indices = @transform_1, window_bounds = array<i64: 8, 1>}, {transform_indices = @transform_2, window_bounds = array<i64: 8, 1>}]} {
    %c0 = arith.constant 0 : index
    %c0_0 = arith.constant 0 : index
    %0 = vector.load %arg1[%c0, %c0_0] : memref<8x256xf32, #tpu.memory_space<vmem>>, vector<8x256xf32>
    %cst = arith.constant dense<0.000000e+00> : vector<8xf32>
    %1 = vector.multi_reduction <add>, %0, %cst [1] : vector<8x256xf32> to vector<8xf32>
    %2 = vector.shape_cast %1 : vector<8xf32> to vector<8x1xf32>
    %cst_1 = arith.constant 3.906250e-03 : f32
    %3 = vector.broadcast %cst_1 : f32 to vector<8x1xf32>
    %4 = arith.mulf %2, %3 : vector<8x1xf32>
    %5 = vector.broadcast %4 : vector<8x1xf32> to vector<8x256xf32>
    %6 = arith.subf %0, %5 : vector<8x256xf32>
    %7 = arith.mulf %6, %6 : vector<8x256xf32>
    %cst_2 = arith.constant dense<0.000000e+00> : vector<8xf32>
    %8 = vector.multi_reduction <add>, %7, %cst_2 [1] : vector<8x256xf32> to vector<8xf32>
    %9 = vector.shape_cast %8 : vector<8xf32> to vector<8x1xf32>
    %cst_3 = arith.constant 0.00392156886 : f32
    %10 = vector.broadcast %cst_3 : f32 to vector<8x1xf32>
    %11 = arith.mulf %9, %10 : vector<8x1xf32>
    %c0_4 = arith.constant 0 : index
    %c0_5 = arith.constant 0 : index
    %12 = vector.load %arg2[%c0_4, %c0_5] : memref<8x1xf32, #tpu.memory_space<vmem>>, vector<8x1xf32>
    tpu.vector_store %arg2[%c0_4, %c0_5], %4 {strides = array<i32>} : memref<8x1xf32, #tpu.memory_space<vmem>>, vector<8x1xf32>,
    %13 = math.sqrt %11 : vector<8x1xf32>
    %c0_6 = arith.constant 0 : index
    %c0_7 = arith.constant 0 : index
    %14 = vector.load %arg3[%c0_6, %c0_7] : memref<8x1xf32, #tpu.memory_space<vmem>>, vector<8x1xf32>
    tpu.vector_store %arg3[%c0_6, %c0_7], %13 {strides = array<i32>} : memref<8x1xf32, #tpu.memory_space<vmem>>, vector<8x1xf32>,
    return
  }
  func.func @transform_0(%arg0: i32) -> (i32, i32) {
    %c0_i32 = arith.constant 0 : i32
    %c0_i32_0 = arith.constant 0 : i32
    return %arg0, %c0_i32 : i32, i32
  }
  func.func @transform_1(%arg0: i32) -> (i32, i32) {
    %c0_i32 = arith.constant 0 : i32
    %c0_i32_0 = arith.constant 0 : i32
    return %arg0, %c0_i32 : i32, i32
  }
  func.func @transform_2(%arg0: i32) -> (i32, i32) {
    %c0_i32 = arith.constant 0 : i32
    %c0_i32_0 = arith.constant 0 : i32
    return %arg0, %c0_i32 : i32, i32
  }
}

</mosaic_0001>

<bundles_post_ra>
// kernel: tpu_custom_call.1
= control target key start
LH: loop header
LB: loop body
LE: loop exit
PB: predicated region body
PF: predicated region fallthrough
CT: control target
= control target key end

     0   :  { %8 = vsyncpa [#allocation3], 0  ;;  %s91_s12 = smov [#allocation2]   ;;  %s118_s0 = inlined_call_operand.hbm [shape: f32[8,256], index: 0, kind: input, shape index: {}]   ;;  %s119_s1 = inlined_call_operand.vmem [shape: f32[8,1], index: 1, kind: output, shape index: {0}]   ;;  %s120_s2 = inlined_call_operand.vmem [shape: f32[8,1], index: 2, kind: output, shape index: {1}]  }
   0x1   :  { %s14_s11 = sshll.u32 %s118_s0, 4  ;;  %s16_s13 = sshll.u32 %s91_s12, 4  ;;  %s15_s11 = int_to_ptr.hbm [resolvable:$true] %s14_s11  ;;  %s17_s13 = int_to_ptr.vmem [resolvable:$true] %s16_s13 }
   0x2   :  { %19 = dma.hbm_to_vmem [thread:$0]  %s15_s11, 256, %s17_s13, [#allocation3]  }
   0x3   :  { %89 = dma.done.wait [#allocation3], 256  }
   0x4   :  { %90 = vsyncadd [#allocation3], 4294967040  ;;  %v24_v0 = vld [vmem:[#allocation2] sm:$0xff]  ;;  %v25_v1 = vld [vmem:[#allocation2 + $0x8] sm:$0xff]  ;;  %vm38_vm0 = vcmask 7168  }
   0x5   :  { %v26_v2 = vadd.f32 %v25_v1, %v24_v0 }
   0x7   :  { %27 = vadd.xlane.f32.xlu0 %v26_v2 }
  0x7a   :  { %v28_v3 = vpop.xlane.xlu0 %27 }
  0x7b   :  { %v29_v4 = vmul.f32 0.00390625, %v28_v3 }
  0x7d   :  { %39 = vst.msk [vmem:[%s119_s1] sm:$0xff] %vm38_vm0, %v29_v4  ;;  %v30_v5 = vsub.f32 %v24_v0, %v29_v4  ;;  %v31_v6 = vsub.f32 %v25_v1, %v29_v4 }
  0x7f   :  { %v32_v7 = vmul.f32 %v30_v5, %v30_v5  ;;  %v33_v8 = vmul.f32 %v31_v6, %v31_v6 }
  0x81   :  { %v34_v9 = vadd.f32 %v33_v8, %v32_v7 }
  0x83   :  { %35 = vadd.xlane.f32.xlu0 %v34_v9 }
  0xf6   :  { %v36_v10 = vpop.xlane.xlu0 %35 }
  0xf7   :  { %v37_v11 = vmul.f32 0.003921569, %v36_v10 }
  0xf9   :  { %63 = vrsqrt.f32 %v37_v11  ;;  %vm47_vm1 = vcmp.eq.f32.partialorder %v37_v11, inf  ;;  %v50_v19 = vand.u32 2147483648, %v37_v11  ;;  %vm49_vm2 = vcmp.eq.f32.partialorder %v37_v11, 0.0 }
  0xff   :  { %v64_v12 = vpop.eup %63 }
 0x100   :  { %v41_v13 = vmul.f32 %v64_v12, %v37_v11 }
 0x102   :  { %v42_v14 = vmul.f32 %v64_v12, %v41_v13 }
 0x104   :  { %v43_v15 = vmul.f32 0.5, %v42_v14 }
 0x106   :  { %v44_v16 = vsub.f32 1.5, %v43_v15 }
 0x108   :  { %v45_v17 = vmul.f32 %v64_v12, %v44_v16 }
 0x10a   :  { %v46_v18 = vmul.f32 %v45_v17, %v37_v11 }
 0x10c   :  { %v48_v20 = vsel %vm47_vm1, %v37_v11, %v46_v18 }
 0x10d   :  { %v51_v21 = vsel %vm49_vm2, %v50_v19, %v48_v20 }
 0x10e   :  { %52 = vst.msk [vmem:[%s120_s2] sm:$0xff] %vm38_vm0, %v51_v21 }
 0x10f   :  { %61 = vsyncpa [#allocation3], 1 }

</bundles_post_ra>
